<compile_context>
chip_gen: v6e
topology: v6e:2x2x1
jax: 0.10.0
libtpu: 0.0.40
codegen_flags: <defaults>
</compile_context>

<pallas_src>
import functools

import jax
import jax.numpy as jnp
from jax.experimental import pallas as pl
from jax.experimental.pallas import tpu as pltpu


# ----------------------------------------------------------------------------
# Kernel
# ----------------------------------------------------------------------------
def _llama_mlp_kernel(x_ref, wgu_ref, wd_ref, o_ref, acc_ref, *, ti):
    # Grid = (M tiles, I tiles).  The I axis (j) is a reduction: the output
    # block index ignores j and acc_ref carries across it, so j stays the last
    # grid axis and stays "arbitrary".
    j = pl.program_id(1)

    @pl.when(j == 0)
    def _():
        acc_ref[...] = jnp.zeros_like(acc_ref)

    x = x_ref[...]                                                     # (tm, H)
    # Single wide MXU pass covering both gate and up projections.
    gu = jnp.dot(x, wgu_ref[...], preferred_element_type=jnp.float32)  # (tm, 2*ti)
    g = gu[:, :ti]
    u = gu[:, ti:]
    h = (g * jax.nn.sigmoid(g)) * u                                    # SiLU in f32
    acc_ref[...] += jnp.dot(h.astype(wd_ref.dtype), wd_ref[...],
                            preferred_element_type=jnp.float32)

    @pl.when(j == pl.num_programs(1) - 1)
    def _():
        o_ref[...] = acc_ref[...].astype(o_ref.dtype)


# ----------------------------------------------------------------------------
# Tile / generation selection helpers
# ----------------------------------------------------------------------------
def _round_up(x, m):
    return (x + m - 1) // m * m


def _tpu_generation():
    try:
        kind = jax.devices()[0].device_kind.lower()
    except Exception:
        return None
    if "v5e" in kind or "v5 lite" in kind or "v5lite" in kind:
        return "v5e"
    if "v6" in kind:
        return "v6e"
    if "v7" in kind or "7x" in kind:
        return "v7x"
    return None


# (default prefill tm, default ti, physical VMEM bytes)
_GEN_DEFAULTS = {
    "v5e": (256, 512, 128 << 20),
    "v6e": (512, 512, 128 << 20),
    "v7x": (384, 256, 64 << 20),
}
_FALLBACK = (256, 256, 64 << 20)   # conservative (fits v7x VMEM)


# ----------------------------------------------------------------------------
# One-time (load-time) weight packing: bf16 cast + tile-major gate|up layout.
# Each tile j of the packed array is [Wg[:, j*ti:(j+1)*ti] | Wu[:, j*ti:(j+1)*ti]]
# stored contiguously as wgu[j] with shape (H, 2*ti)  ->  one contiguous DMA.
# ----------------------------------------------------------------------------
def pack_llama_mlp_weights(wg, wu, wd, *, ti=None, dtype=jnp.bfloat16):
    H, I = wg.shape
    assert wu.shape == (H, I), "up_proj weight must be (H, I)"
    assert wd.shape == (I, H), "down_proj weight must be (I, H)"
    assert I % 128 == 0, "intermediate_size must be a multiple of 128"

    if ti is None:
        ti = _GEN_DEFAULTS.get(_tpu_generation(), _FALLBACK)[1]
    ti = max(128, (min(ti, I) // 128) * 128)
    while I % ti:
        ti -= 128

    n_j = I // ti
    wgu = jnp.concatenate(
        [wg.reshape(H, n_j, ti), wu.reshape(H, n_j, ti)], axis=2)      # (H, n_j, 2*ti)
    wgu = jnp.transpose(wgu, (1, 0, 2)).astype(dtype)                  # (n_j, H, 2*ti)
    return wgu, wd.astype(dtype)


# ----------------------------------------------------------------------------
# pallas_call wrapper (jitted; weights arrive pre-packed)
# ----------------------------------------------------------------------------
@functools.partial(jax.jit, static_argnames=("tm", "buffered_weights"))
def _llama_mlp_packed(x2, wgu, wd, *, tm, buffered_weights):
    M, H = x2.shape
    n_j, _, two_ti = wgu.shape
    ti = two_ti // 2
    I = n_j * ti

    M_pad = _round_up(M, tm)
    if M_pad != M:
        x2 = jnp.pad(x2, ((0, M_pad - M), (0, 0)))
    n_i = M_pad // tm

    x_bytes = x2.dtype.itemsize
    w_bytes = wgu.dtype.itemsize
    nbuf_w = 3 if buffered_weights else 2

    # VMEM footprint: pipelined tiles + f32 accumulator + in-kernel f32 temporaries.
    vmem_bytes = (
        2 * tm * H * x_bytes              # x tiles (double-buffered)
        + 2 * tm * H * x_bytes            # output tiles
        + nbuf_w * H * two_ti * w_bytes   # packed gate|up weight tiles
        + nbuf_w * ti * H * w_bytes       # down-proj weight tiles
        + tm * H * 4                      # f32 accumulator scratch
        + tm * two_ti * 4 + tm * ti * 4   # f32 gu / h temporaries inside the kernel
    )
    vmem_cap = _GEN_DEFAULTS.get(_tpu_generation(), _FALLBACK)[2]
    vmem_limit = int(min(max(vmem_bytes + (4 << 20), 32 << 20), vmem_cap - (8 << 20)))

    cost = pl.CostEstimate(
        flops=6 * M_pad * H * I,                       # gate + up + down matmuls
        transcendentals=M_pad * I,                     # sigmoid inside SiLU
        bytes_accessed=(2 * M_pad * H * x_bytes        # x in, out
                        + 3 * H * I * w_bytes),        # wg, wu, wd
    )

    # Weight specs: contiguous tile-major DMA; deeper pipeline for decode streaming.
    if buffered_weights:
        wgu_spec = pl.BlockSpec((None, H, two_ti), lambda i, j: (j, 0, 0),
                                pipeline_mode=pl.Buffered(3))
        wd_spec = pl.BlockSpec((ti, H), lambda i, j: (j, 0),
                               pipeline_mode=pl.Buffered(3))
    else:
        wgu_spec = pl.BlockSpec((None, H, two_ti), lambda i, j: (j, 0, 0))
        wd_spec = pl.BlockSpec((ti, H), lambda i, j: (j, 0))

    kernel = functools.partial(_llama_mlp_kernel, ti=ti)

    out = pl.pallas_call(
        kernel,
        out_shape=jax.ShapeDtypeStruct((M_pad, H), x2.dtype),
        grid_spec=pltpu.PrefetchScalarGridSpec(
            num_scalar_prefetch=0,
            grid=(n_i, n_j),                           # (parallel M, reduction I)
            in_specs=[
                pl.BlockSpec((tm, H), lambda i, j: (i, 0)),   # x tile (resident over j)
                wgu_spec,                                     # packed [gate|up] tile
                wd_spec,                                      # down-proj tile
            ],
            out_specs=pl.BlockSpec((tm, H), lambda i, j: (i, 0)),
            scratch_shapes=[pltpu.VMEM((tm, H), jnp.float32)],
        ),
        compiler_params=pltpu.CompilerParams(
            dimension_semantics=("parallel", "arbitrary"),
            vmem_limit_bytes=vmem_limit,
        ),
        cost_estimate=cost,
    )(x2, wgu, wd)

    if M_pad != M:
        out = out[:M]
    return out


# ----------------------------------------------------------------------------
# Public entry point: x [..., H], pre-packed wgu [I//ti, H, 2*ti], wd [I, H]
# ----------------------------------------------------------------------------
def llama_mlp(x, wgu, wd, *, tm=None):
    """Fused LlamaMLP: down_proj( SiLU(x @ Wg) * (x @ Wu) ) with packed weights."""
    H = x.shape[-1]
    n_j, Hw, two_ti = wgu.shape
    assert Hw == H, "packed weight hidden dim mismatch"
    ti = two_ti // 2
    I = n_j * ti
    assert wd.shape == (I, H)

    # Keep the MXU on the bf16 path regardless of caller activation dtype.
    x2 = x.astype(wgu.dtype).reshape(-1, H)
    M = x2.shape[0]

    gen = _tpu_generation()
    tm_default, _, _ = _GEN_DEFAULTS.get(gen, _FALLBACK)
    if tm is None:
        if M <= 256:
            # Decode / tiny prefill: don't burn MXU rows (or VMEM) on zero padding.
            tm = _round_up(M, 16)
        else:
            tm = min(tm_default, _round_up(M, 128))
    tm = max(16, _round_up(tm, 16))

    n_i = pl.cdiv(M, tm)
    # Single M tile + long weight stream => deeper weight pipeline to hide DMA ramp-up.
    buffered_weights = bool(n_i == 1 and n_j >= 3)

    out = _llama_mlp_packed(x2, wgu, wd, tm=tm, buffered_weights=buffered_weights)
    return out.astype(x.dtype).reshape(x.shape)


# ----------------------------------------------------------------------------
# Self-test (small shapes consistent with the module)
# ----------------------------------------------------------------------------
if __name__ == "__main__":
    batch, seq = 2, 8
    hidden_size, intermediate_size = 128, 256

    key = jax.random.PRNGKey(0)
    kx, kg, ku, kd = jax.random.split(key, 4)

    x = jax.random.normal(kx, (batch, seq, hidden_size), jnp.float32).astype(jnp.bfloat16)
    wg = jax.random.normal(kg, (hidden_size, intermediate_size), jnp.float32) * 0.02
    wu = jax.random.normal(ku, (hidden_size, intermediate_size), jnp.float32) * 0.02
    wd = jax.random.normal(kd, (intermediate_size, hidden_size), jnp.float32) * 0.02

    # One-time, load-time packing (bf16 cast + tile-major gate|up layout).
    wgu_packed, wd_packed = pack_llama_mlp_weights(wg, wu, wd)
    wgu_packed = jax.block_until_ready(wgu_packed)
    wd_packed = jax.block_until_ready(wd_packed)

    out = llama_mlp(x, wgu_packed, wd_packed)
    out = jax.block_until_ready(out)

    # Pure-JAX f32 reference over the same bf16-quantized inputs.
    xf = x.astype(jnp.float32)
    wgf = wg.astype(jnp.bfloat16).astype(jnp.float32)
    wuf = wu.astype(jnp.bfloat16).astype(jnp.float32)
    wdf = wd.astype(jnp.bfloat16).astype(jnp.float32)
    g = xf @ wgf
    u = xf @ wuf
    ref = (g * jax.nn.sigmoid(g) * u) @ wdf

    assert out.shape == (batch, seq, hidden_size)
    assert out.dtype == x.dtype
    max_err = jnp.max(jnp.abs(out.astype(jnp.float32) - ref))
    # Note: h is cast to bf16 before the down projection; error grows with I.
    assert max_err < 1e-2, f"max abs err {max_err}"
    print("KERNEL_OK")
</pallas_src>

<mosaic_0001>
module attributes {stable_mosaic.version = 11 : i64} {
  func.func @_llama_mlp_kernel(%arg0: i32, %arg1: i32, %arg2: memref<16x128xbf16, #tpu.memory_space<vmem>>, %arg3: memref<1x128x512xbf16, #tpu.memory_space<vmem>>, %arg4: memref<256x128xbf16, #tpu.memory_space<vmem>>, %arg5: memref<16x128xbf16, #tpu.memory_space<vmem>>, %arg6: memref<16x128xf32, #tpu.memory_space<vmem>>) attributes {dimension_semantics = [#tpu.dimension_semantics<parallel>, #tpu.dimension_semantics<arbitrary>], iteration_bounds = array<i64: 1, 1>, scalar_prefetch = 0 : i64, scratch_operands = 1 : i64, tpu.core_type = #tpu.core_type<tc>, window_params = [{transform_indices = @transform_0, window_bounds = array<i64: 16, 128>}, {transform_indices = @transform_1, window_bounds = array<i64: 1, 128, 512>}, {transform_indices = @transform_2, window_bounds = array<i64: 256, 128>}, {transform_indices = @transform_3, window_bounds = array<i64: 16, 128>}]} {
    %c0_i32 = arith.constant 0 : i32
    %0 = arith.cmpi eq, %arg1, %c0_i32 : i32
    %1 = arith.extui %0 : i1 to i32
    %c0_i32_0 = arith.constant 0 : i32
    %2 = arith.cmpi ne, %1, %c0_i32_0 : i32
    scf.if %2 {
      %cst_15 = arith.constant 0.000000e+00 : f32
      %25 = vector.broadcast %cst_15 : f32 to vector<16x128xf32>
      %c0_16 = arith.constant 0 : index
      %c0_17 = arith.constant 0 : index
      %26 = vector.load %arg6[%c0_16, %c0_17] : memref<16x128xf32, #tpu.memory_space<vmem>>, vector<16x128xf32>
      tpu.vector_store %arg6[%c0_16, %c0_17], %25 {strides = array<i32>} : memref<16x128xf32, #tpu.memory_space<vmem>>, vector<16x128xf32>,
    } else {
    }
    %c0 = arith.constant 0 : index
    %c0_1 = arith.constant 0 : index
    %3 = vector.load %arg2[%c0, %c0_1] : memref<16x128xbf16, #tpu.memory_space<vmem>>, vector<16x128xbf16>
    %c0_2 = arith.constant 0 : index
    %c0_3 = arith.constant 0 : index
    %c0_4 = arith.constant 0 : index
    %4 = vector.load %arg3[%c0_2, %c0_3, %c0_4] : memref<1x128x512xbf16, #tpu.memory_space<vmem>>, vector<1x128x512xbf16>
    %5 = vector.shape_cast %4 : vector<1x128x512xbf16> to vector<128x512xbf16>
    %cst = arith.constant dense<0.000000e+00> : vector<16x512xf32>
    %6 = tpu.matmul %3, %5, %cst {dimension_numbers = #tpu.dot_dimension_numbers<[1], [0], [0], [1], [0, 0, 1, 1], [], []>} : vector<16x128xbf16>, vector<128x512xbf16>, vector<16x512xf32> -> vector<16x512xf32>
    %7 = vector.extract_strided_slice %6 {offsets = [0, 0], sizes = [16, 256], strides = [1, 1]} : vector<16x512xf32> to vector<16x256xf32>
    %8 = vector.extract_strided_slice %6 {offsets = [0, 256], sizes = [16, 256], strides = [1, 1]} : vector<16x512xf32> to vector<16x256xf32>
    %9 = arith.negf %7 : vector<16x256xf32>
    %10 = math.exp %9 : vector<16x256xf32>
    %cst_5 = arith.constant 1.000000e+00 : f32
    %11 = vector.broadcast %cst_5 : f32 to vector<16x256xf32>
    %12 = arith.addf %11, %10 : vector<16x256xf32>
    %13 = arith.divf %11, %12 : vector<16x256xf32>
    %14 = arith.mulf %7, %13 : vector<16x256xf32>
    %15 = arith.mulf %14, %8 : vector<16x256xf32>
    %c0_6 = arith.constant 0 : index
    %c0_7 = arith.constant 0 : index
    %16 = vector.load %arg6[%c0_6, %c0_7] : memref<16x128xf32, #tpu.memory_space<vmem>>, vector<16x128xf32>
    %17 = arith.truncf %15 : vector<16x256xf32> to vector<16x256xbf16>
    %c0_8 = arith.constant 0 : index
    %c0_9 = arith.constant 0 : index
    %18 = vector.load %arg4[%c0_8, %c0_9] : memref<256x128xbf16, #tpu.memory_space<vmem>>, vector<256x128xbf16>
    %cst_10 = arith.constant dense<0.000000e+00> : vector<16x128xf32>
    %19 = tpu.matmul %17, %18, %cst_10 {dimension_numbers = #tpu.dot_dimension_numbers<[1], [0], [0], [1], [0, 0, 1, 1], [], []>} : vector<16x256xbf16>, vector<256x128xbf16>, vector<16x128xf32> -> vector<16x128xf32>
    %20 = arith.addf %16, %19 : vector<16x128xf32>
    %c0_11 = arith.constant 0 : index
    %c0_12 = arith.constant 0 : index
    %21 = vector.load %arg6[%c0_11, %c0_12] : memref<16x128xf32, #tpu.memory_space<vmem>>, vector<16x128xf32>
    tpu.vector_store %arg6[%c0_11, %c0_12], %20 {strides = array<i32>} : memref<16x128xf32, #tpu.memory_space<vmem>>, vector<16x128xf32>,
    %c0_i32_13 = arith.constant 0 : i32
    %22 = arith.cmpi eq, %arg1, %c0_i32_13 : i32
    %23 = arith.extui %22 : i1 to i32
    %c0_i32_14 = arith.constant 0 : i32
    %24 = arith.cmpi ne, %23, %c0_i32_14 : i32
    scf.if %24 {
      %c0_15 = arith.constant 0 : index
      %c0_16 = arith.constant 0 : index
      %25 = vector.load %arg6[%c0_15, %c0_16] : memref<16x128xf32, #tpu.memory_space<vmem>>, vector<16x128xf32>
      %26 = arith.truncf %25 : vector<16x128xf32> to vector<16x128xbf16>
      %c0_17 = arith.constant 0 : index
      %c0_18 = arith.constant 0 : index
      %27 = vector.load %arg5[%c0_17, %c0_18] : memref<16x128xbf16, #tpu.memory_space<vmem>>, vector<16x128xbf16>
      tpu.vector_store %arg5[%c0_17, %c0_18], %26 {strides = array<i32>} : memref<16x128xbf16, #tpu.memory_space<vmem>>, vector<16x128xbf16>,
    } else {
    }
    return
  }
  func.func @transform_0(%arg0: i32, %arg1: i32) -> (i32, i32) {
    %c0_i32 = arith.constant 0 : i32
    %c0_i32_0 = arith.constant 0 : i32
    return %arg0, %c0_i32 : i32, i32
  }
  func.func @transform_1(%arg0: i32, %arg1: i32) -> (i32, i32, i32) {
    %c0_i32 = arith.constant 0 : i32
    %c0_i32_0 = arith.constant 0 : i32
    %c0_i32_1 = arith.constant 0 : i32
    return %arg1, %c0_i32, %c0_i32_0 : i32, i32, i32
  }
  func.func @transform_2(%arg0: i32, %arg1: i32) -> (i32, i32) {
    %c0_i32 = arith.constant 0 : i32
    %c0_i32_0 = arith.constant 0 : i32
    return %arg1, %c0_i32 : i32, i32
  }
  func.func @transform_3(%arg0: i32, %arg1: i32) -> (i32, i32) {
    %c0_i32 = arith.constant 0 : i32
    %c0_i32_0 = arith.constant 0 : i32
    return %arg0, %c0_i32 : i32, i32
  }
}

</mosaic_0001>

<bundles_post_ra>
// kernel: _llama_mlp_packed.1
= control target key start
LH: loop header
LB: loop body
LE: loop exit
PB: predicated region body
PF: predicated region fallthrough
CT: control target
= control target key end

     0   :  { %8 = vsyncpa [#allocation4], 0  ;;  %s901_s0 = inlined_call_operand.hbm [shape: bf16[16,128], index: 0, kind: input, shape index: {}]   ;;  %s902_s1 = inlined_call_operand.hbm [shape: bf16[1,128,512], index: 1, kind: input, shape index: {}]   ;;  %s903_s2 = inlined_call_operand.hbm [shape: bf16[256,128], index: 2, kind: input, shape index: {}]   ;;  %s904_s3 = inlined_call_operand.hbm [shape: bf16[16,128], index: 3, kind: output, shape index: {}]  }
   0x1   :  { %9 = vsyncpa [#allocation7], 0 }
   0x2   :  { %10 = vsyncpa [#allocation5], 0  ;;  %s851_s12 = smov [#allocation6]  }
   0x3   :  { %s28_s13 = sshll.u32 %s851_s12, 4  ;;  %s29_s13 = int_to_ptr.vmem [resolvable:$true] %s28_s13 }
   0x4   :  { %s773_s14 = scalar_lea.vmem %s29_s13, 4096  ;;  %p778_p1 = scmp.lt.s32.totalorder %s29_s13, %s29_s13 }
   0x5   :  { %p774_p0 = scmp.ne.s32.totalorder %s29_s13, %s773_s14  ;;  %p779_p2 = scmp.lt.s32.totalorder %s773_s14, %s773_s14 }
   0x7   :  { %p780_p3 = por %p779_p2, %p778_p1 }
   0x9   :  { %p781_p4 = pnand %p780_p3, %p774_p0 }
   0xb   :  { %784 = shalt.err (!%p781_p4)
}
   0xc   :  { %s852_s15 = smov 256   ;;  %s853_s16 = smov 16  }
   0xd   :  { %34 = dma.hbm_to_vmem [thread:$0]  %s902_s1, 4096, %s29_s13, [#allocation7], %s852_s15, %s852_s15, %s853_s16  }
   0xe   :  { %s854_s19 = smov [#allocation3]  }
   0xf   :  { %s16_s20 = sshll.u32 %s854_s19, 4  ;;  %s17_s20 = int_to_ptr.vmem [resolvable:$true] %s16_s20 }
  0x10   :  { %s793_s21 = scalar_lea.vmem %s17_s20, 128  ;;  %p798_p6 = scmp.lt.s32.totalorder %s17_s20, %s17_s20 }
  0x11   :  { %p794_p5 = scmp.ne.s32.totalorder %s17_s20, %s793_s21  ;;  %p799_p7 = scmp.lt.s32.totalorder %s793_s21, %s793_s21 }
  0x13   :  { %p800_p8 = por %p799_p7, %p798_p6 }
  0x15   :  { %p801_p9 = pnand %p800_p8, %p794_p5 }
  0x17   :  { %804 = shalt.err (!%p801_p9)
}
  0x18   :  { %s855_s22 = smov 64   ;;  %s856_s23 = smov 4  }
  0x19   :  { %22 = dma.hbm_to_vmem [thread:$0]  %s901_s0, 128, %s17_s20, [#allocation4], %s855_s22, %s855_s22, %s856_s23  }
  0x1a   :  { %s857_s1 = smov [#allocation8]  }
  0x1b   :  { %s40_s26 = sshll.u32 %s857_s1, 4  ;;  %s41_s26 = int_to_ptr.vmem [resolvable:$true] %s40_s26 }
  0x1c   :  { %s813_s27 = scalar_lea.vmem %s41_s26, 2048  ;;  %p818_p11 = scmp.lt.s32.totalorder %s41_s26, %s41_s26 }
  0x1d   :  { %p814_p10 = scmp.ne.s32.totalorder %s41_s26, %s813_s27  ;;  %p819_p12 = scmp.lt.s32.totalorder %s813_s27, %s813_s27 }
  0x1f   :  { %p820_p13 = por %p819_p12, %p818_p11 }
  0x21   :  { %p821_p0 = pnand %p820_p13, %p814_p10 }
  0x23   :  { %824 = shalt.err (!%p821_p0)
}
  0x24   :  { %46 = dma.hbm_to_vmem [thread:$0]  %s903_s2, 2048, %s41_s26, [#allocation7], %s855_s22, %s855_s22, %s856_s23  }
  0x25   :  { %845 = dma.done.wait [#allocation4], 128  }
  0x26   :  { %846 = vsyncadd [#allocation4], 4294967168 }
  0x27   :  { %847 = dma.done.wait [#allocation7], 6144  }
  0x28   :  { %848 = vsyncadd [#allocation7], 4294961152  ;;  %v858_v0 = vmov 0   ;;  %v684_v1 = vld [vmem:[#allocation6 + $0xe4] ss:$16 sps:$4 sm:$0xff]   ;;  %v711_v28 = vld [vmem:[#allocation3] sm:$0xff]  }
  0x29   :  { %295 = vmatprep.mubr.bf16.mxu0 %v858_v0  ;;  %338 = vmatprep.mubr.bf16.mxu1 %v858_v0  ;;  %v686_v2 = vld [vmem:[#allocation6 + $0xe0] ss:$16 sps:$4 sm:$0xff]   ;;  %v687_v3 = vld [vmem:[#allocation6 + $0xc4] ss:$16 sps:$4 sm:$0xff]   ;;  %v707_v9 = vld [vmem:[#allocation6 + $0xec] ss:$16 sps:$4 sm:$0xff]  }
  0x2a   :  { %263 = vmatprep.subr.bf16.mxu0 %v684_v1  ;;  %v689_v4 = vld [vmem:[#allocation6 + $0xc0] ss:$16 sps:$4 sm:$0xff]   ;;  %v690_v5 = vld [vmem:[#allocation6 + $0xa4] ss:$16 sps:$4 sm:$0xff]   ;;  %v710_v10 = vld [vmem:[#allocation6 + $0xe8] ss:$16 sps:$4 sm:$0xff]   ;;  %306 = vmatprep.subr.bf16.mxu1 %v707_v9 }
  0x2b   :  { %264 = vmatpush1.bf16.msra.mxu0 %v686_v2  ;;  %v692_v6 = vld [vmem:[#allocation6 + $0xa0] ss:$16 sps:$4 sm:$0xff]   ;;  %v693_v7 = vld [vmem:[#allocation6 + $0x84] ss:$16 sps:$4 sm:$0xff]   ;;  %v712_v12 = vld [vmem:[#allocation6 + $0xcc] ss:$16 sps:$4 sm:$0xff]   ;;  %307 = vmatpush1.bf16.msra.mxu1 %v710_v10 }
  0x2c   :  { %265 = vmatprep.subr.bf16.mxu0 %v687_v3  ;;  %v695_v8 = vld [vmem:[#allocation6 + $0x80] ss:$16 sps:$4 sm:$0xff]   ;;  %v696_v11 = vld [vmem:[#allocation6 + $0x64] ss:$16 sps:$4 sm:$0xff]   ;;  %v714_v13 = vld [vmem:[#allocation6 + $0xc8] ss:$16 sps:$4 sm:$0xff]   ;;  %308 = vmatprep.subr.bf16.mxu1 %v712_v12 }
  0x2d   :  { %v698_v14 = vld [vmem:[#allocation6 + $0x60] ss:$16 sps:$4 sm:$0xff]   ;;  %v715_v15 = vld [vmem:[#allocation6 + $0xac] ss:$16 sps:$4 sm:$0xff]   ;;  %v699_v16 = vld [vmem:[#allocation6 + $0x44] ss:$16 sps:$4 sm:$0xff]  }
  0x2e   :  { %v717_v17 = vld [vmem:[#allocation6 + $0xa8] ss:$16 sps:$4 sm:$0xff]   ;;  %v701_v18 = vld [vmem:[#allocation6 + $0x40] ss:$16 sps:$4 sm:$0xff]   ;;  %v718_v19 = vld [vmem:[#allocation6 + $0x8c] ss:$16 sps:$4 sm:$0xff]  }
  0x2f   :  { %266 = vmatpush1.bf16.msra.mxu0 %v689_v4  ;;  %309 = vmatpush1.bf16.msra.mxu1 %v714_v13  ;;  %v702_v20 = vld [vmem:[#allocation6 + $0x24] ss:$16 sps:$4 sm:$0xff]   ;;  %v704_v21 = vld [vmem:[#allocation6 + $0x20] ss:$16 sps:$4 sm:$0xff]   ;;  %v720_v22 = vld [vmem:[#allocation6 + $0x88] ss:$16 sps:$4 sm:$0xff]  }
  0x30   :  { %267 = vmatprep.subr.bf16.mxu0 %v690_v5  ;;  %310 = vmatprep.subr.bf16.mxu1 %v715_v15  ;;  %v705_v23 = vld [vmem:[#allocation6 + $0x4] ss:$16 sps:$4 sm:$0xff]   ;;  %v721_v24 = vld [vmem:[#allocation6 + $0x6c] ss:$16 sps:$4 sm:$0xff]   ;;  %v723_v25 = vld [vmem:[#allocation6 + $0x68] ss:$16 sps:$4 sm:$0xff]  }
  0x31   :  { %v709_v26 = vld [vmem:[#allocation6] ss:$16 sps:$4 sm:$0xff]   ;;  %v724_v27 = vld [vmem:[#allocation6 + $0x4c] ss:$16 sps:$4 sm:$0xff]   ;;  %v726_v29 = vld [vmem:[#allocation6 + $0x48] ss:$16 sps:$4 sm:$0xff]  }
  0x32   :  { %v727_v30 = vld [vmem:[#allocation6 + $0x2c] ss:$16 sps:$4 sm:$0xff]   ;;  %v729_v31 = vld [vmem:[#allocation6 + $0x28] ss:$16 sps:$4 sm:$0xff]   ;;  %v735_v36 = vld [vmem:[#allocation8 + $0x70] sm:$0xff]   ;;  %s859_s0 = smov [#allocation9]  }
  0x33   :  { %268 = vmatpush1.bf16.msra.mxu0 %v692_v6  ;;  %311 = vmatpush1.bf16.msra.mxu1 %v717_v17  ;;  %v730_v32 = vld [vmem:[#allocation6 + $0xc] ss:$16 sps:$4 sm:$0xff]   ;;  %v732_v33 = vld [vmem:[#allocation6 + $0x8] ss:$16 sps:$4 sm:$0xff]   ;;  %v736_v37 = vld [vmem:[#allocation8 + $0x30] sm:$0xff]   ;;  %s578_s2 = sshll.u32 %s859_s0, 4  ;;  %s579_s2 = int_to_ptr.vmem [resolvable:$true] %s578_s2 }
  0x34   :  { %269 = vmatprep.subr.bf16.mxu0 %v693_v7  ;;  %312 = vmatprep.subr.bf16.mxu1 %v718_v19  ;;  %v733_v34 = vld [vmem:[#allocation8 + $0x78] sm:$0xff]   ;;  %v737_v38 = vld [vmem:[#allocation8 + $0x68] sm:$0xff]   ;;  %v739_v40 = vld [vmem:[#allocation8 + $0x60] sm:$0xff]   ;;  %s825_s30 = scalar_lea.vmem %s579_s2, 128  ;;  %p830_p2 = scmp.lt.s32.totalorder %s579_s2, %s579_s2 }
  0x35   :  { %v734_v35 = vld [vmem:[#allocation8 + $0x38] sm:$0xff]   ;;  %v738_v39 = vld [vmem:[#allocation8 + $0x28] sm:$0xff]   ;;  %v740_v41 = vld [vmem:[#allocation8 + $0x20] sm:$0xff]   ;;  %p826_p1 = scmp.ne.s32.totalorder %s579_s2, %s825_s30  ;;  %p831_p3 = scmp.lt.s32.totalorder %s825_s30, %s825_s30 }
  0x36   :  { %v741_v42 = vld [vmem:[#allocation8 + $0x58] sm:$0xff]   ;;  %v743_v44 = vld [vmem:[#allocation8 + $0x50] sm:$0xff]   ;;  %v745_v46 = vld [vmem:[#allocation8 + $0x48] sm:$0xff]  }
  0x37   :  { %270 = vmatpush1.bf16.msra.mxu0 %v695_v8  ;;  %313 = vmatpush1.bf16.msra.mxu1 %v720_v22  ;;  %v742_v43 = vld [vmem:[#allocation8 + $0x18] sm:$0xff]   ;;  %v744_v45 = vld [vmem:[#allocation8 + $0x10] sm:$0xff]   ;;  %v746_v47 = vld [vmem:[#allocation8 + $0x8] sm:$0xff]   ;;  %p832_p4 = por %p831_p3, %p830_p2 }
  0x38   :  { %271 = vmatprep.subr.bf16.mxu0 %v696_v11  ;;  %314 = vmatprep.subr.bf16.mxu1 %v721_v24  ;;  %v747_v48 = vld [vmem:[#allocation8 + $0x40] sm:$0xff]  }
  0x39   :  { %v748_v49 = vld [vmem:[#allocation8] sm:$0xff]   ;;  %p833_p5 = pnand %p832_p4, %p826_p1 }
  0x3b   :  { %272 = vmatpush1.bf16.msra.mxu0 %v698_v14  ;;  %315 = vmatpush1.bf16.msra.mxu1 %v723_v25 }
  0x3c   :  { %273 = vmatprep.subr.bf16.mxu0 %v699_v16  ;;  %316 = vmatprep.subr.bf16.mxu1 %v724_v27 }
  0x3f   :  { %274 = vmatpush1.bf16.msra.mxu0 %v701_v18  ;;  %317 = vmatpush1.bf16.msra.mxu1 %v726_v29 }
  0x40   :  { %275 = vmatprep.subr.bf16.mxu0 %v702_v20  ;;  %318 = vmatprep.subr.bf16.mxu1 %v727_v30 }
  0x43   :  { %276 = vmatpush1.bf16.msra.mxu0 %v704_v21  ;;  %319 = vmatpush1.bf16.msra.mxu1 %v729_v31 }
  0x44   :  { %277 = vmatprep.subr.bf16.mxu0 %v705_v23  ;;  %320 = vmatprep.subr.bf16.mxu1 %v730_v32 }
  0x47   :  { %278 = vmatpush1.bf16.msra.mxu0 %v709_v26  ;;  %321 = vmatpush1.bf16.msra.mxu1 %v732_v33 }
  0x48   :  { %653 = vmatprep.subr.bf16.mxu0 %v733_v34 }
  0x4a   :  { %296 = vmatmul.mubr.bf16.vlgmr.msra.gmra.mxu0 %v711_v28  ;;  %339 = vmatmul.mubr.bf16.vlgmr.msra.gmra.mxu1 %v711_v28 }
  0x4b   :  { %654 = vmatpush3.bf16.msra.mxu0 %v734_v35 }
  0x4c   :  { %655 = vmatprep.subr.bf16.mxu0 %v735_v36 }
  0x4f   :  { %656 = vmatpush3.bf16.msra.mxu0 %v736_v37 }
  0x50   :  { %657 = vmatprep.subr.bf16.mxu0 %v737_v38 }
  0x53   :  { %658 = vmatpush3.bf16.msra.mxu0 %v738_v39 }
  0x54   :  { %659 = vmatprep.subr.bf16.mxu0 %v739_v40 }
  0x57   :  { %660 = vmatpush3.bf16.msra.mxu0 %v740_v41 }
  0x58   :  { %661 = vmatprep.subr.bf16.mxu0 %v741_v42 }
  0x5b   :  { %662 = vmatpush3.bf16.msra.mxu0 %v742_v43 }
  0x5c   :  { %663 = vmatprep.subr.bf16.mxu0 %v743_v44 }
  0x5f   :  { %664 = vmatpush3.bf16.msra.mxu0 %v744_v45 }
  0x60   :  { %665 = vmatprep.subr.bf16.mxu0 %v745_v46 }
  0x63   :  { %666 = vmatpush3.bf16.msra.mxu0 %v746_v47 }
  0x64   :  { %667 = vmatprep.subr.bf16.mxu0 %v747_v48 }
  0x67   :  { %668 = vmatpush3.bf16.msra.mxu0 %v748_v49 }
 0x10a   :  { %v297_v50 = vpop.f32.mrf.mxu0  ;;  %v340_v2 = vpop.f32.mrf.mxu1 }
 0x10b   :  { %v624_v51 = vmul.f32 -1.442695, %v297_v50 }
 0x10c   :  { %v299_v52 = vpop.f32.mrf.mxu0  ;;  %v342_v3 = vpop.f32.mrf.mxu1 }
 0x10d   :  { %749 = vpow2.f32 %v624_v51  ;;  %v625_v53 = vmul.f32 -1.442695, %v299_v52 }
 0x10e   :  { %v301_v54 = vpop.f32.mrf.mxu0  ;;  %v344_v7 = vpop.f32.mrf.mxu1 }
 0x10f   :  { %751 = vpow2.f32 %v625_v53  ;;  %v626_v55 = vmul.f32 -1.442695, %v301_v54 }
 0x110   :  { %v303_v56 = vpop.f32.mrf.mxu0  ;;  %v346_v14 = vpop.f32.mrf.mxu1 }
 0x111   :  { %753 = vpow2.f32 %v626_v55  ;;  %v627_v57 = vmul.f32 -1.442695, %v303_v56 }
 0x113   :  { %755 = vpow2.f32 %v627_v57 }
 0x11a   :  { %v750_v58 = vpop.eup %749 }
 0x11b   :  { %v361_v60 = vadd.f32 1.0, %v750_v58 }
 0x11c   :  { %v752_v59 = vpop.eup %751 }
 0x11d   :  { %v362_v61 = vadd.f32 1.0, %v752_v59 }
 0x11e   :  { %v754_v62 = vpop.eup %753 }
 0x11f   :  { %757 = vrcp.f32 %v362_v61  ;;  %v363_v63 = vadd.f32 1.0, %v754_v62 }
 0x120   :  { %v756_v0 = vpop.eup %755  ;;  %759 = vrcp.f32 %v361_v60 }
 0x121   :  { %761 = vrcp.f32 %v363_v63  ;;  %v364_v1 = vadd.f32 1.0, %v756_v0 }
 0x123   :  { %763 = vrcp.f32 %v364_v1 }
 0x12c   :  { %v758_v4 = vpop.eup %757 }
 0x12d   :  { %v760_v5 = vpop.eup %759  ;;  %v374_v8 = vmul.f32 %v758_v4, %v299_v52 }
 0x12e   :  { %v762_v6 = vpop.eup %761  ;;  %v373_v11 = vmul.f32 %v760_v5, %v297_v50 }
 0x12f   :  { %v375_v9 = vmul.f32 %v762_v6, %v301_v54  ;;  %v378_v15 = vmul.f32 %v374_v8, %v342_v3 }
 0x130   :  { %v764_v10 = vpop.eup %763  ;;  %v377_v17 = vmul.f32 %v373_v11, %v340_v2 }
 0x131   :  { %v376_v12 = vmul.f32 %v764_v10, %v303_v56  ;;  %v379_v13 = vmul.f32 %v375_v9, %v344_v7 }
 0x133   :  { %v380_v16 = vmul.f32 %v376_v12, %v346_v14  ;;  %v383_v19 = vpack.c.bf16 %v379_v13, %v377_v17 }
 0x135   :  { %v384_v18 = vpack.c.bf16 %v380_v16, %v378_v15 }
 0x137   :  { %545 = vmatprep.mubr.bf16.mxu0 %v384_v18 }
 0x138   :  { %546 = vmatmul.mubr.bf16.vlgmr.msra.gmra.mxu0 %v383_v19 }
 0x1f8   :  { %v669_v20 = vpop.f32.mrf.mxu0 }
 0x1fa   :  { %v670_v21 = vpop.f32.mrf.mxu0 }
 0x1fb   :  { %v671_v24 = vadd.f32 %v670_v21, %v669_v20 }
 0x1fc   :  { %v672_v22 = vpop.f32.mrf.mxu0 }
 0x1fe   :  { %v673_v23 = vpop.f32.mrf.mxu0 }
 0x1ff   :  { %v674_v25 = vadd.f32 %v673_v23, %v672_v22 }
 0x201   :  { %v651_v26 = vpack.c.bf16 %v674_v25, %v671_v24 }
 0x203   :  { %652 = vst [vmem:[#allocation9] sm:$0xff] %v651_v26  }
 0x204   :  { %836 = shalt.err (!%p833_p5)
}
 0x205   :  { %584 = dma.vmem_to_hbm [thread:$0]  %s579_s2, 128, %s904_s3, [#allocation5], %s855_s22, %s855_s22, %s856_s23  }
 0x206   :  { %849 = dma.done.wait [#allocation5], 128  }
 0x207   :  { %850 = vsyncadd [#allocation5], 4294967168 }
 0x208   :  { %588 = vsyncpa [#allocation4], 1 }
 0x209   :  { %589 = vsyncpa [#allocation7], 1 }
 0x20a   :  { %590 = vsyncpa [#allocation5], 1 }

</bundles_post_ra>
